<compile_context>
chip_gen: v5e
topology: v5e:2x2
jax: 0.10.0
libtpu: 0.0.40
codegen_flags: <defaults>
</compile_context>

<pallas_src>
import jax
import jax.numpy as jnp
from jax.experimental import pallas as pl
from jax.experimental.pallas import tpu as pltpu


_LANES = 1024        # lane width of the flattened slab (multiple of 128)
_MAX_ROWS = 512      # max rows per block -> <= 2 MiB f32 per input block
_SPLITS = 2          # leading "parallel" grid axis (feeds both TCs on v7x)
_TINY_MAX = 16384    # below this a pallas launch costs more than the reduce


# ------------------------------ tiling plan ----------------------------------

def _plan(n, max_rows, lanes):
    """Static tiling plan for a flat reduction over n elements."""
    L = lanes
    while L > 128 and n % L != 0:
        L //= 2
    R = -(-n // L)                       # rows of the (maybe padded) slab
    tm = R if R <= max_rows else max_rows
    blocks = -(-R // tm)
    n_split = _SPLITS if (blocks >= _SPLITS and blocks % _SPLITS == 0) else 1
    bps = blocks // n_split              # reduction steps per split
    need_mask = (blocks * tm * L) != n   # any pad rows / ragged tail?
    return L, tm, bps, n_split, need_mask


def _lane_dense(x, L):
    """Lane-dense (R, L) view. Free reshape when n % L == 0 (typical); the
    rare non-divisible case pads (values are masked in-kernel anyway)."""
    flat = x.reshape(-1)
    pad = (-flat.size) % L
    if pad:
        flat = jnp.pad(flat, (0, pad))
    return flat.reshape(flat.size // L, L)


# ------------------------------ kernel bodies --------------------------------

def _make_mse_kernel(n_valid, tm, L, bps, need_mask):
    def kernel(o_ref, t_ref, out_ref, acc_ref):
        s = pl.program_id(0)
        i = pl.program_id(1)

        @pl.when(i == 0)
        def _():
            acc_ref[...] = jnp.zeros((tm, L), jnp.float32)

        d = o_ref[...].astype(jnp.float32) - t_ref[...].astype(jnp.float32)
        sq = d * d
        if need_mask:
            row0 = (s * bps + i) * tm
            rows = jax.lax.broadcasted_iota(jnp.int32, (tm, L), 0) + row0
            cols = jax.lax.broadcasted_iota(jnp.int32, (tm, L), 1)
            sq = jnp.where(rows * L + cols < n_valid, sq, 0.0)
        acc_ref[...] = acc_ref[...] + sq          # pure VPU, per-lane partials

        @pl.when(i == bps - 1)
        def _():                                  # single cross-lane reduce
            out_ref[0, 0] = jnp.sum(acc_ref[...])
    return kernel


def _make_max_kernel(n_valid, tm, L, bps, need_mask):
    def kernel(x_ref, out_ref, acc_ref):
        s = pl.program_id(0)
        i = pl.program_id(1)

        @pl.when(i == 0)
        def _():
            acc_ref[...] = jnp.full((tm, L), -jnp.inf, jnp.float32)

        v = x_ref[...].astype(jnp.float32)
        if need_mask:
            row0 = (s * bps + i) * tm
            rows = jax.lax.broadcasted_iota(jnp.int32, (tm, L), 0) + row0
            cols = jax.lax.broadcasted_iota(jnp.int32, (tm, L), 1)
            v = jnp.where(rows * L + cols < n_valid, v, -jnp.inf)
        acc_ref[...] = jnp.maximum(acc_ref[...], v)

        @pl.when(i == bps - 1)
        def _():
            out_ref[0, 0] = jnp.max(acc_ref[...])
    return kernel


# ------------------------------ pallas wrappers -------------------------------

def _reduction_call(kernel, inputs, L, tm, bps, n_split):
    blk = pl.BlockSpec((tm, L), lambda s, i: (s * bps + i, 0))
    return pl.pallas_call(
        kernel,
        out_shape=jax.ShapeDtypeStruct((n_split, 1), jnp.float32),
        grid_spec=pltpu.PrefetchScalarGridSpec(
            num_scalar_prefetch=0,
            grid=(n_split, bps),
            in_specs=[blk] * len(inputs),
            out_specs=pl.BlockSpec((1, 1), lambda s, i: (s, 0),
                                   memory_space=pltpu.MemorySpace.SMEM),
            scratch_shapes=[pltpu.VMEM((tm, L), jnp.float32)]),
        compiler_params=pltpu.CompilerParams(
            dimension_semantics=("parallel", "arbitrary")),
    )(*inputs)


def mse_loss_pallas(output, target, *, max_rows=_MAX_ROWS, lanes=_LANES):
    """Mean-squared-error over all elements (matches torch.nn.MSELoss())."""
    assert output.shape == target.shape
    n = output.size
    L, tm, bps, n_split, need_mask = _plan(n, max_rows, lanes)
    o2 = _lane_dense(output, L)
    t2 = _lane_dense(target, L)
    partials = _reduction_call(
        _make_mse_kernel(n, tm, L, bps, need_mask), (o2, t2),
        L, tm, bps, n_split)
    return jnp.sum(partials) / jnp.float32(n)


def global_max_pallas(x, *, max_rows=_MAX_ROWS, lanes=_LANES):
    """torch.max(x) over all elements."""
    n = x.size
    L, tm, bps, n_split, need_mask = _plan(n, max_rows, lanes)
    x2 = _lane_dense(x, L)
    partials = _reduction_call(
        _make_max_kernel(n, tm, L, bps, need_mask), (x2,),
        L, tm, bps, n_split)
    return jnp.max(partials)


def global_max(x):
    # A pallas launch costs microseconds of fixed overhead; tiny quantizer
    # activations are cheaper reduced directly.
    if x.size < _TINY_MAX:
        return jnp.max(x.astype(jnp.float32))
    return global_max_pallas(x)


# -------------------- NegativeActivationPenaltyLoss forward -------------------

def negative_activation_penalty_loss(output, target,
                                     quantizer_last_outputs=None,
                                     penalty_weight=0.1):
    """Forward pass of NegativeActivationPenaltyLoss with MSE as base_loss_fn.

    `quantizer_last_outputs` plays the role of the `last_output` buffers on
    UniformAffineQuantizer modules found via model.named_modules().
    """
    base_loss = mse_loss_pallas(output, target)
    if quantizer_last_outputs is None:
        return base_loss
    # TODO(synk): batch all (large) quantizer maxes into a single pallas_call
    # using scalar-prefetched offsets instead of one launch per activation.
    neg_penalty = jnp.float32(0.0)
    for act in quantizer_last_outputs:
        tmp_max = global_max(act)
        neg_penalty = neg_penalty + tmp_max * tmp_max
    return base_loss + jnp.float32(penalty_weight) * neg_penalty


# ---------------------------------- main --------------------------------------

if __name__ == "__main__":
    key = jax.random.PRNGKey(0)
    k1, k2, k3, k4 = jax.random.split(key, 4)

    # NCHW, matching the PyTorch convention.
    output = jax.random.normal(k1, (2, 4, 16, 16), dtype=jnp.float32)
    target = jax.random.normal(k2, (2, 4, 16, 16), dtype=jnp.float32)

    # Deterministic stand-ins for quantizer `last_output` activations:
    # one large enough to exercise the Pallas max kernel, one tiny (jnp path).
    quantizer_acts = [
        jax.random.normal(k3, (4, 8, 32, 32), dtype=jnp.float32),
        jax.random.normal(k4, (2, 8, 8, 8), dtype=jnp.float32),
    ]

    total = negative_activation_penalty_loss(
        output, target, quantizer_acts, penalty_weight=0.1)
    total = jax.block_until_ready(total)

    # Pure-JAX reference for correctness.
    base_ref = jnp.mean((output - target) ** 2)
    pen_ref = sum(jnp.max(a.astype(jnp.float32)) ** 2 for a in quantizer_acts)
    ref = base_ref + 0.1 * pen_ref

    assert jnp.allclose(total, ref, rtol=1e-5, atol=1e-5), (total, ref)
    print("KERNEL_OK")
</pallas_src>

<mosaic_0001>
module attributes {stable_mosaic.version = 11 : i64} {
  func.func @kernel(%arg0: i32, %arg1: i32, %arg2: memref<2x1024xf32, #tpu.memory_space<vmem>>, %arg3: memref<2x1024xf32, #tpu.memory_space<vmem>>, %arg4: memref<1x1xf32, #tpu.memory_space<smem>>, %arg5: memref<2x1024xf32, #tpu.memory_space<vmem>>) attributes {dimension_semantics = [#tpu.dimension_semantics<parallel>, #tpu.dimension_semantics<arbitrary>], iteration_bounds = array<i64: 1, 1>, scalar_prefetch = 0 : i64, scratch_operands = 1 : i64, tpu.core_type = #tpu.core_type<tc>, window_params = [{transform_indices = @transform_0, window_bounds = array<i64: 2, 1024>}, {transform_indices = @transform_1, window_bounds = array<i64: 2, 1024>}, {transform_indices = @transform_2, window_bounds = array<i64: 1, 1>}]} {
    %c0_i32 = arith.constant 0 : i32
    %0 = arith.cmpi eq, %arg1, %c0_i32 : i32
    %1 = arith.extui %0 : i1 to i32
    %c0_i32_0 = arith.constant 0 : i32
    %2 = arith.cmpi ne, %1, %c0_i32_0 : i32
    scf.if %2 {
      %cst = arith.constant 0.000000e+00 : f32
      %13 = vector.broadcast %cst : f32 to vector<2x1024xf32>
      %c0_10 = arith.constant 0 : index
      %c0_11 = arith.constant 0 : index
      %14 = vector.load %arg5[%c0_10, %c0_11] : memref<2x1024xf32, #tpu.memory_space<vmem>>, vector<2x1024xf32>
      tpu.vector_store %arg5[%c0_10, %c0_11], %13 {strides = array<i32>} : memref<2x1024xf32, #tpu.memory_space<vmem>>, vector<2x1024xf32>,
    } else {
    }
    %c0 = arith.constant 0 : index
    %c0_1 = arith.constant 0 : index
    %3 = vector.load %arg2[%c0, %c0_1] : memref<2x1024xf32, #tpu.memory_space<vmem>>, vector<2x1024xf32>
    %c0_2 = arith.constant 0 : index
    %c0_3 = arith.constant 0 : index
    %4 = vector.load %arg3[%c0_2, %c0_3] : memref<2x1024xf32, #tpu.memory_space<vmem>>, vector<2x1024xf32>
    %5 = arith.subf %3, %4 : vector<2x1024xf32>
    %6 = arith.mulf %5, %5 : vector<2x1024xf32>
    %c0_4 = arith.constant 0 : index
    %c0_5 = arith.constant 0 : index
    %7 = vector.load %arg5[%c0_4, %c0_5] : memref<2x1024xf32, #tpu.memory_space<vmem>>, vector<2x1024xf32>
    %8 = arith.addf %7, %6 : vector<2x1024xf32>
    %c0_6 = arith.constant 0 : index
    %c0_7 = arith.constant 0 : index
    %9 = vector.load %arg5[%c0_6, %c0_7] : memref<2x1024xf32, #tpu.memory_space<vmem>>, vector<2x1024xf32>
    tpu.vector_store %arg5[%c0_6, %c0_7], %8 {strides = array<i32>} : memref<2x1024xf32, #tpu.memory_space<vmem>>, vector<2x1024xf32>,
    %c0_i32_8 = arith.constant 0 : i32
    %10 = arith.cmpi eq, %arg1, %c0_i32_8 : i32
    %11 = arith.extui %10 : i1 to i32
    %c0_i32_9 = arith.constant 0 : i32
    %12 = arith.cmpi ne, %11, %c0_i32_9 : i32
    scf.if %12 {
      %c0_10 = arith.constant 0 : index
      %c0_11 = arith.constant 0 : index
      %13 = vector.load %arg5[%c0_10, %c0_11] : memref<2x1024xf32, #tpu.memory_space<vmem>>, vector<2x1024xf32>
      %14 = vector.shape_cast %13 : vector<2x1024xf32> to vector<1x2x1024xf32>
      %cst = arith.constant dense<0.000000e+00> : vector<1xf32>
      %15 = vector.multi_reduction <add>, %14, %cst [1, 2] : vector<1x2x1024xf32> to vector<1xf32>
      %16 = vector.shape_cast %15 : vector<1xf32> to vector<1x1x1xf32>
      %17 = vector.extract %16[0, 0, 0] : f32 from vector<1x1x1xf32>
      %c0_12 = arith.constant 0 : index
      %c0_13 = arith.constant 0 : index
      %18 = memref.load %arg4[%c0_12, %c0_13] : memref<1x1xf32, #tpu.memory_space<smem>>
      memref.store %17, %arg4[%c0_12, %c0_13] : memref<1x1xf32, #tpu.memory_space<smem>>
    } else {
    }
    return
  }
  func.func @transform_0(%arg0: i32, %arg1: i32) -> (i32, i32) {
    %c1_i32 = arith.constant 1 : i32
    %0 = arith.muli %arg0, %c1_i32 : i32
    %1 = arith.addi %0, %arg1 : i32
    %c0_i32 = arith.constant 0 : i32
    %c0_i32_0 = arith.constant 0 : i32
    return %1, %c0_i32 : i32, i32
  }
  func.func @transform_1(%arg0: i32, %arg1: i32) -> (i32, i32) {
    %c1_i32 = arith.constant 1 : i32
    %0 = arith.muli %arg0, %c1_i32 : i32
    %1 = arith.addi %0, %arg1 : i32
    %c0_i32 = arith.constant 0 : i32
    %c0_i32_0 = arith.constant 0 : i32
    return %1, %c0_i32 : i32, i32
  }
  func.func @transform_2(%arg0: i32, %arg1: i32) -> (i32, i32) {
    %c0_i32 = arith.constant 0 : i32
    %c0_i32_0 = arith.constant 0 : i32
    return %arg0, %c0_i32 : i32, i32
  }
}

</mosaic_0001>

<bundles_post_ra>
// kernel: tpu_custom_call.1
= control target key start
LH: loop header
LB: loop body
LE: loop exit
PB: predicated region body
PF: predicated region fallthrough
CT: control target
= control target key end

     0   :  { %7 = vsyncpa [#allocation4], 0  ;;  %s246_s0 = inlined_call_operand.hbm [shape: f32[2,1024], index: 0, kind: input, shape index: {}]   ;;  %s247_s1 = inlined_call_operand.hbm [shape: f32[2,1024], index: 1, kind: input, shape index: {}]   ;;  %s248_s2 = inlined_call_operand.hbm [shape: f32[1,1], index: 2, kind: output, shape index: {}]  }
   0x1   :  { %8 = vsyncpa [#allocation7], 0 }
   0x2   :  { %9 = vsyncpa [#allocation5], 0  ;;  %s19_s11 = sshll.u32 %s246_s0, 4  ;;  %s211_s12 = smov [#allocation3]   ;;  %s20_s11 = int_to_ptr.hbm [resolvable:$true] %s19_s11 }
   0x3   :  { %s21_s13 = sshll.u32 %s211_s12, 4  ;;  %s34_s16 = sshll.u32 %s247_s1, 4  ;;  %s22_s13 = int_to_ptr.vmem [resolvable:$true] %s21_s13  ;;  %s35_s16 = int_to_ptr.hbm [resolvable:$true] %s34_s16 }
   0x4   :  { %24 = dma.hbm_to_vmem [thread:$0]  %s20_s11, 256, %s22_s13, [#allocation4]  }
   0x5   :  { %s212_s17 = smov [#allocation6]  }
   0x6   :  { %s36_s18 = sshll.u32 %s212_s17, 4  ;;  %s37_s18 = int_to_ptr.vmem [resolvable:$true] %s36_s18 }
   0x7   :  { %39 = dma.hbm_to_vmem [thread:$0]  %s35_s16, 256, %s37_s18, [#allocation7]  }
   0x8   :  { %205 = dma.done.wait [#allocation4], 256  }
   0x9   :  { %206 = vsyncadd [#allocation4], 4294967040 }
   0xa   :  { %207 = dma.done.wait [#allocation7], 256  }
   0xb   :  { %208 = vsyncadd [#allocation7], 4294967040  ;;  %v56_v0 = vld [vmem:[#allocation3] sm:$0xff]  ;;  %v57_v1 = vld [vmem:[#allocation3 + $0x8] sm:$0xff]  ;;  %vm96_vm0 = vcmask 1041408   ;;  %s128_s19 = sshll.u32 %s248_s2, 4  ;;  %s129_s19 = int_to_ptr.hbm [resolvable:$true] %s128_s19 }
   0xc   :  { %v58_v2 = vld [vmem:[#allocation6] sm:$0xff]  ;;  %v59_v3 = vld [vmem:[#allocation6 + $0x8] sm:$0xff]  ;;  %s213_s21 = smov [#allocation8]  }
   0xd   :  { %v60_v4 = vsub.f32 %v56_v0, %v58_v2  ;;  %v61_v5 = vsub.f32 %v57_v1, %v59_v3 }
   0xf   :  { %v62_v6 = vmul.f32 %v60_v4, %v60_v4  ;;  %v63_v7 = vmul.f32 %v61_v5, %v61_v5 }
  0x11   :  { %77 = vst [vmem:[#allocation1] ss:$4 sm:$0xff] %v62_v6 }
  0x12   :  { %79 = vst [vmem:[#allocation1 + $0x20] ss:$4 sm:$0xff] %v63_v7 }
  0x18   :  { %v80_v8 = vld.sshfl [vmem:[#allocation1] sm:$0xff pattern:$0x73625140]  ;;  %v81_v9 = vld.sshfl [vmem:[#allocation1 + $0x8] sm:$0xff pattern:$0x73625140] }
  0x19   :  { %v82_v10 = vld.sshfl [vmem:[#allocation1 + $0x10] sm:$0xff pattern:$0x73625140]  ;;  %v83_v11 = vld.sshfl [vmem:[#allocation1 + $0x18] sm:$0xff pattern:$0x73625140] }
  0x1a   :  { %v97_v12 = vsel %vm96_vm0, %v80_v8, 0.0  ;;  %v98_v13 = vsel %vm96_vm0, %v81_v9, 0.0  ;;  %v100_v14 = vsel %vm96_vm0, %v82_v10, 0.0  ;;  %v84_v15 = vld.sshfl [vmem:[#allocation1 + $0x20] sm:$0xff pattern:$0x73625140] }
  0x1b   :  { %v99_v16 = vadd.f32 %v98_v13, %v97_v12  ;;  %v102_v17 = vsel %vm96_vm0, %v83_v11, 0.0  ;;  %v85_v18 = vld.sshfl [vmem:[#allocation1 + $0x28] sm:$0xff pattern:$0x73625140]  ;;  %v104_v20 = vsel %vm96_vm0, %v84_v15, 0.0 }
  0x1c   :  { %v86_v21 = vld.sshfl [vmem:[#allocation1 + $0x30] sm:$0xff pattern:$0x73625140]  ;;  %v106_v23 = vsel %vm96_vm0, %v85_v18, 0.0 }
  0x1d   :  { %v101_v19 = vadd.f32 %v100_v14, %v99_v16  ;;  %v87_v24 = vld.sshfl [vmem:[#allocation1 + $0x38] sm:$0xff pattern:$0x73625140]  ;;  %v108_v26 = vsel %vm96_vm0, %v86_v21, 0.0 }
  0x1e   :  { %v110_v28 = vsel %vm96_vm0, %v87_v24, 0.0 }
  0x1f   :  { %v103_v22 = vadd.f32 %v102_v17, %v101_v19 }
  0x21   :  { %v105_v25 = vadd.f32 %v104_v20, %v103_v22 }
  0x23   :  { %v107_v27 = vadd.f32 %v106_v23, %v105_v25 }
  0x25   :  { %v109_v29 = vadd.f32 %v108_v26, %v107_v27 }
  0x27   :  { %v111_v30 = vadd.f32 %v110_v28, %v109_v29 }
  0x29   :  { %112 = vadd.xlane.f32.xlu0 %v111_v30 }
  0x9c   :  { %v113_v31 = vpop.xlane.xlu0 %112 }
  0x9d   :  { %v114_v32 = vrot.slane %v113_v31, 4 }
  0x9f   :  { %v115_v33 = vadd.f32 %v114_v32, %v113_v31 }
  0xa1   :  { %v116_v34 = vrot.slane %v115_v33, 2 }
  0xa3   :  { %v117_v35 = vadd.f32 %v116_v34, %v115_v33 }
  0xa5   :  { %v118_v36 = vrot.slane %v117_v35, 1 }
  0xa7   :  { %v119_v37 = vadd.f32 %v118_v36, %v117_v35 }
  0xa9   :  { %140 = vpush %v119_v37 }
  0xda   :  { %s141_s20 = spop %140 }
  0xdb   :  { %122 = sst [smem:[#allocation8]] %s141_s20 }
  0xdc   :  { %131 = dma.smem_to_hbm %s213_s21, 16, %s129_s19, [#allocation5]  }
  0xdd   :  { %209 = dma.done.wait [#allocation5], 16  }
  0xde   :  { %210 = vsyncadd [#allocation5], 4294967280 }
  0xdf   :  { %136 = sfence }
  0xe0   :  { %137 = vsyncpa [#allocation4], 1 }
  0xe1   :  { %138 = vsyncpa [#allocation7], 1 }
  0xe2   :  { %139 = vsyncpa [#allocation5], 1 }

</bundles_post_ra>
